<compile_context>
chip_gen: v7x
topology: tpu7x:2x2x1
jax: 0.10.0
libtpu: 0.0.40
codegen_flags: <defaults>
</compile_context>

<pallas_src>
import math
import functools

import jax
import jax.numpy as jnp
from jax.experimental import pallas as pl
from jax.experimental.pallas import tpu as pltpu


# ----------------------------------------------------------------------------
# Buffer setup (equivalent of PositionalEncoding.__init__) — plain JAX.
# ----------------------------------------------------------------------------
def make_pe_buffer(d_model: int, seq_len: int) -> jnp.ndarray:
    """Builds the (1, seq_len, d_model) sinusoidal positional-encoding table."""
    position = jnp.arange(0, seq_len, dtype=jnp.float32)[:, None]           # (S, 1)
    div_term = jnp.exp(
        jnp.arange(0, d_model, 2, dtype=jnp.float32)
        * (-math.log(10000.0) / d_model)
    )                                                                        # (D/2,)
    pe = jnp.zeros((seq_len, d_model), dtype=jnp.float32)
    pe = pe.at[:, 0::2].set(jnp.sin(position * div_term))
    pe = pe.at[:, 1::2].set(jnp.cos(position * div_term))
    return pe[None, :, :]                                                    # (1, S, D)


# ----------------------------------------------------------------------------
# Pallas kernels (operate on the lane-dense (B, S*D) fold of the activations)
# ----------------------------------------------------------------------------
def _pe_add_kernel(x_ref, pe_ref, o_ref):
    # eval mode: out = x + pe (dropout is identity).  The (1, TC) pe block
    # broadcasts across the batch rows of the (B, TC) x block.
    o_ref[...] = (x_ref[...] + pe_ref[...]).astype(o_ref.dtype)


def _pe_add_dropout_kernel(x_ref, pe_ref, u_ref, o_ref, *, p):
    # training mode: inverted dropout of (x + pe).  u ~ Uniform[0, 1).
    y = x_ref[...] + pe_ref[...]
    keep = (u_ref[...] >= jnp.float32(p)).astype(y.dtype)       # P(drop) = p
    scale = jnp.asarray(1.0 / (1.0 - p), dtype=y.dtype)
    o_ref[...] = (y * (keep * scale)).astype(o_ref.dtype)


# ----------------------------------------------------------------------------
# Tiling helper: column tile on the fused (S*D) axis, ~1 MiB per x block,
# multiple of 128 lanes (or the full axis when it is short).
# ----------------------------------------------------------------------------
def _pick_col_tile(n_cols: int, n_rows: int, itemsize: int,
                   target_block_bytes: int = 1 << 20) -> int:
    if n_cols <= 128:
        return n_cols                              # full trailing dim: always legal
    tc = target_block_bytes // max(1, n_rows * itemsize)
    tc = max(128, (tc // 128) * 128)               # lane-dense multiple of 128
    return min(tc, n_cols)


# ----------------------------------------------------------------------------
# Wrapper (equivalent of PositionalEncoding.forward)
# ----------------------------------------------------------------------------
def positional_encoding_forward(x, pe, *, dropout_p=0.0, training=False,
                                rng_key=None):
    """x: (B, S, D); pe: (1, seq_len, D) with seq_len >= S."""
    B, S, D = x.shape
    pe_s = pe[:, :S, :].astype(x.dtype)            # (1, S, D), activation dtype

    # Fold (S, D) -> lane-dense trailing dim.
    N = S * D
    x2 = x.reshape(B, N)
    pe2 = pe_s.reshape(1, N)

    tc = _pick_col_tile(N, B, x.dtype.itemsize)
    grid = (pl.cdiv(N, tc),)

    row_spec = pl.BlockSpec((B, tc), lambda i: (0, i))      # x / mask / out
    pe_spec = pl.BlockSpec((1, tc), lambda i: (0, i))       # broadcast over rows

    if (not training) or dropout_p == 0.0:
        out2 = pl.pallas_call(
            _pe_add_kernel,
            out_shape=jax.ShapeDtypeStruct((B, N), x.dtype),
            grid=grid,
            in_specs=[row_spec, pe_spec],
            out_specs=row_spec,
            compiler_params=pltpu.CompilerParams(
                dimension_semantics=("parallel",)),
        )(x2, pe2)
        return out2.reshape(B, S, D)

    if rng_key is None:
        rng_key = jax.random.PRNGKey(0)
    # TODO(synk): on real TPU hardware the uniforms could be drawn in-kernel
    # via pltpu.prng_seed / pltpu.prng_random_bits (saving one HBM stream),
    # but those primitives do not lower in CPU/interpret mode.
    u = jax.random.uniform(rng_key, (B, N), dtype=jnp.float32)

    kernel = functools.partial(_pe_add_dropout_kernel, p=float(dropout_p))
    out2 = pl.pallas_call(
        kernel,
        out_shape=jax.ShapeDtypeStruct((B, N), x.dtype),
        grid=grid,
        in_specs=[row_spec, pe_spec, pl.BlockSpec((B, tc), lambda i: (0, i))],
        out_specs=row_spec,
        compiler_params=pltpu.CompilerParams(
            dimension_semantics=("parallel",)),
    )(x2, pe2, u)
    return out2.reshape(B, S, D)


# ----------------------------------------------------------------------------
# Demo / self-check
# ----------------------------------------------------------------------------
if __name__ == "__main__":
    d_model = 32
    seq_len = 16          # buffer length (module __init__ arg)
    batch, seq = 2, 8     # input uses only the first `seq` positions
    dropout_p = 0.1

    key = jax.random.PRNGKey(0)
    key_x, key_drop = jax.random.split(key)
    x = jax.random.normal(key_x, (batch, seq, d_model), dtype=jnp.float32)
    pe = make_pe_buffer(d_model, seq_len)

    # --- Eval-mode forward (dropout is identity): exact reference check. ---
    out_eval = positional_encoding_forward(x, pe, dropout_p=dropout_p,
                                           training=False)
    out_eval = jax.block_until_ready(out_eval)
    ref = x + pe[:, :seq, :]
    assert out_eval.shape == x.shape and out_eval.dtype == x.dtype
    assert jnp.allclose(out_eval, ref, atol=1e-6, rtol=1e-6)

    # --- Training-mode forward: in-kernel mask/scale, reference rebuilt from
    # the same uniforms the wrapper draws. ---
    out_train = positional_encoding_forward(
        x, pe, dropout_p=dropout_p, training=True, rng_key=key_drop)
    out_train = jax.block_until_ready(out_train)

    u = jax.random.uniform(key_drop, (batch, seq * d_model),
                           dtype=jnp.float32).reshape(batch, seq, d_model)
    scale = 1.0 / (1.0 - dropout_p)
    expected = jnp.where(u >= jnp.float32(dropout_p), ref * scale, 0.0)
    assert jnp.allclose(out_train, expected, atol=1e-5, rtol=1e-5)
    # Sanity: every element is either the scaled kept value or exactly zero.
    assert bool(jnp.all(
        jnp.isclose(out_train, ref * scale, atol=1e-5, rtol=1e-5)
        | (out_train == 0.0)))

    print("KERNEL_OK")
</pallas_src>

<mosaic_0001>
module attributes {stable_mosaic.version = 11 : i64} {
  func.func @_pe_add_kernel(%arg0: i32, %arg1: memref<2x256xf32, #tpu.memory_space<vmem>>, %arg2: memref<1x256xf32, #tpu.memory_space<vmem>>, %arg3: memref<2x256xf32, #tpu.memory_space<vmem>>) attributes {dimension_semantics = [#tpu.dimension_semantics<parallel>], iteration_bounds = array<i64: 1>, scalar_prefetch = 0 : i64, scratch_operands = 0 : i64, tpu.core_type = #tpu.core_type<tc>, window_params = [{transform_indices = @transform_0, window_bounds = array<i64: 2, 256>}, {transform_indices = @transform_1, window_bounds = array<i64: 1, 256>}, {transform_indices = @transform_2, window_bounds = array<i64: 2, 256>}]} {
    %c0 = arith.constant 0 : index
    %c0_0 = arith.constant 0 : index
    %0 = vector.load %arg1[%c0, %c0_0] : memref<2x256xf32, #tpu.memory_space<vmem>>, vector<2x256xf32>
    %c0_1 = arith.constant 0 : index
    %c0_2 = arith.constant 0 : index
    %1 = vector.load %arg2[%c0_1, %c0_2] : memref<1x256xf32, #tpu.memory_space<vmem>>, vector<1x256xf32>
    %2 = vector.broadcast %1 : vector<1x256xf32> to vector<2x256xf32>
    %3 = arith.addf %0, %2 : vector<2x256xf32>
    %c0_3 = arith.constant 0 : index
    %c0_4 = arith.constant 0 : index
    %4 = vector.load %arg3[%c0_3, %c0_4] : memref<2x256xf32, #tpu.memory_space<vmem>>, vector<2x256xf32>
    tpu.vector_store %arg3[%c0_3, %c0_4], %3 {strides = array<i32>} : memref<2x256xf32, #tpu.memory_space<vmem>>, vector<2x256xf32>,
    return
  }
  func.func @transform_0(%arg0: i32) -> (i32, i32) {
    %c0_i32 = arith.constant 0 : i32
    %c0_i32_0 = arith.constant 0 : i32
    return %c0_i32, %arg0 : i32, i32
  }
  func.func @transform_1(%arg0: i32) -> (i32, i32) {
    %c0_i32 = arith.constant 0 : i32
    %c0_i32_0 = arith.constant 0 : i32
    return %c0_i32, %arg0 : i32, i32
  }
  func.func @transform_2(%arg0: i32) -> (i32, i32) {
    %c0_i32 = arith.constant 0 : i32
    %c0_i32_0 = arith.constant 0 : i32
    return %c0_i32, %arg0 : i32, i32
  }
}

</mosaic_0001>

<bundles_post_ra>
// kernel: tpu_custom_call.1
= control target key start
LH: loop header
LB: loop body
LE: loop exit
PB: predicated region body
PF: predicated region fallthrough
CT: control target
= control target key end

     0   :  { %7 = vsyncpa [#allocation3], 0  ;;  %s157_s0 = inlined_call_operand.hbm [shape: f32[2,256], index: 0, kind: input, shape index: {}]   ;;  %s158_s1 = inlined_call_operand.vmem [shape: f32[1,256], index: 1, kind: input, shape index: {}]   ;;  %s159_s2 = inlined_call_operand.hbm [shape: f32[2,256], index: 2, kind: output, shape index: {}]  }
   0x1   :  { %8 = vsyncpa [#allocation4], 0  ;;  %s112_s9 = smov [#allocation2]   ;;  %s64_s13 = scalar_lea.hbm %s157_s0, 64 }
   0x2   :  { %s15_s10 = sshll.u32 %s112_s9, 4  ;;  %p65_p0 = scmp.ne.s32.totalorder %s157_s0, %s64_s13  ;;  %s16_s10 = int_to_ptr.vmem [resolvable:$true] %s15_s10 }
   0x3   :  { %p68_p1 = scmp.lt.u32.totalorder %s64_s13, %s157_s0 }
   0x5   :  { %p70_p2 = pnand %p68_p1, %p65_p0 }
   0x7   :  { %73 = shalt.err (!%p70_p2)
}
   0x8   :  { %s74_s18 = scalar_lea.vmem %s16_s10, 64  ;;  %p79_p4 = scmp.lt.s32.totalorder %s16_s10, %s16_s10 }
   0x9   :  { %p75_p3 = scmp.ne.s32.totalorder %s16_s10, %s74_s18  ;;  %p80_p5 = scmp.lt.s32.totalorder %s74_s18, %s74_s18 }
   0xb   :  { %p81_p6 = por %p80_p5, %p79_p4 }
   0xd   :  { %p82_p7 = pnand %p81_p6, %p75_p3 }
   0xf   :  { %85 = shalt.err (!%p82_p7)
}
  0x10   :  { %18 = dma.hbm_to_vmem [thread:$0]  %s157_s0, 64, %s16_s10, [#allocation3]  }
  0x11   :  { %108 = dma.done.wait [#allocation3], 64  }
  0x12   :  { %109 = vsyncadd [#allocation3], 4294967232  ;;  %v27_v0 = vlaneseq  ;;  %v113_v1 = vmov 1983009808   ;;  %v25_v7 = vld [vmem:[%s158_s1] sm:$0x3] }
  0x13   :  { %v37_v2 = vunpack.c.l.s4 %v113_v1  ;;  %v24_v12 = vld [vmem:[#allocation2] sm:$0xf]  ;;  %s114_s23 = smov [#allocation5]  }
  0x14   :  { %v28_v3 = vshrl.u32 %v27_v0, 7  ;;  %s52_s0 = sshll.u32 %s114_s23, 4  ;;  %s53_s0 = int_to_ptr.vmem [resolvable:$true] %s52_s0 }
  0x15   :  { %v38_v6 = vunpack.c.0.s8 %v37_v2  ;;  %s86_s24 = scalar_lea.vmem %s53_s0, 64  ;;  %p91_p9 = scmp.lt.s32.totalorder %s53_s0, %s53_s0 }
  0x16   :  { %v29_v4 = vsub.s32 0, %v28_v3  ;;  %v33_v5 = vsub.s32 1, %v28_v3  ;;  %p87_p8 = scmp.ne.s32.totalorder %s53_s0, %s86_s24  ;;  %p92_p10 = scmp.lt.s32.totalorder %s86_s24, %s86_s24 }
  0x17   :  { %v41_v10 = vsub.s32 %v38_v6, %v28_v3 }
  0x18   :  { %v30_v8 = vrot.slane %v25_v7, %v29_v4  ;;  %v34_v9 = vrot.slane %v25_v7, %v33_v5  ;;  %p93_p11 = por %p92_p10, %p91_p9 }
  0x1a   :  { %v35_v11 = vcombine.low %v30_v8, %v34_v9  ;;  %p94_p12 = pnand %p93_p11, %p87_p8 }
  0x1c   :  { %v42_v13 = vrot.slane %v35_v11, %v41_v10 }
  0x1e   :  { %v44_v14 = vadd.f32 %v42_v13, %v24_v12 }
  0x20   :  { %45 = vst [vmem:[#allocation5] sm:$0xf] %v44_v14 }
  0x21   :  { %97 = shalt.err (!%p94_p12)
}
  0x22   :  { %s98_s26 = scalar_lea.hbm %s159_s2, 64 }
  0x23   :  { %p99_p13 = scmp.ne.s32.totalorder %s159_s2, %s98_s26  ;;  %p102_p0 = scmp.lt.u32.totalorder %s98_s26, %s159_s2 }
  0x25   :  { %p104_p1 = pnand %p102_p0, %p99_p13 }
  0x27   :  { %107 = shalt.err (!%p104_p1)
}
  0x28   :  { %55 = dma.vmem_to_hbm [thread:$0]  %s53_s0, 64, %s159_s2, [#allocation4]  }
  0x29   :  { %110 = dma.done.wait [#allocation4], 64  }
  0x2a   :  { %111 = vsyncadd [#allocation4], 4294967232 }
  0x2b   :  { %59 = vsyncpa [#allocation3], 1 }
  0x2c   :  { %60 = vsyncpa [#allocation4], 1 }

</bundles_post_ra>
